<compile_context>
chip_gen: v7x
topology: tpu7x:2x2x1
jax: 0.10.0
libtpu: 0.0.40
codegen_flags: <defaults>
</compile_context>

<pallas_src>
import functools

import jax
import jax.numpy as jnp
from jax.experimental import pallas as pl
from jax.experimental.pallas import tpu as pltpu

LANE = 128
SUBLANE = 8
CO_PAD_TO = 8      # Cout padded only to a sublane multiple (full-extent block)
TM_MAX = 512       # 512 x 4096 f32 patch tile = 8 MiB


def _round_up(x, m):
    return (x + m - 1) // m * m


def _cdiv(a, b):
    return (a + b - 1) // b


# ---------------------------------------------------------------------------
# Pallas kernel: o = sigmoid(patches @ w + b)
# ---------------------------------------------------------------------------
def conv_bias_sigmoid_kernel(p_ref, w_ref, b_ref, o_ref):
    # p: (TM, K) f32, w: (K, COp) bf16, b: (1, COp) f32 -> o: (TM, COp) f32
    p = p_ref[...].astype(jnp.bfloat16)          # cast on VPU, hides under DMA/MXU
    y = jnp.dot(p, w_ref[...], preferred_element_type=jnp.float32)
    y = y + b_ref[...]
    o_ref[...] = jax.nn.sigmoid(y)


def conv_sigmoid_tiled(patches, w_mm, b_row, tm):
    m_pad, k = patches.shape
    co_pad = w_mm.shape[1]
    grid = (m_pad // tm,)
    return pl.pallas_call(
        conv_bias_sigmoid_kernel,
        out_shape=jax.ShapeDtypeStruct((m_pad, co_pad), jnp.float32),
        grid_spec=pltpu.PrefetchScalarGridSpec(
            num_scalar_prefetch=0,
            grid=grid,
            in_specs=[
                pl.BlockSpec((tm, k), lambda i: (i, 0)),       # patch tile (f32)
                pl.BlockSpec((k, co_pad), lambda i: (0, 0)),   # weight, resident
                pl.BlockSpec((1, co_pad), lambda i: (0, 0)),   # bias row
            ],
            out_specs=pl.BlockSpec((tm, co_pad), lambda i: (i, 0)),
        ),
        compiler_params=pltpu.CompilerParams(
            dimension_semantics=("parallel",),   # shards M tiles over v7x's 2 TCs
            vmem_limit_bytes=24 << 20,           # headroom for v5e's 16 MiB default
        ),
    )(patches, w_mm, b_row)


# ---------------------------------------------------------------------------
# JAX glue: parameter preparation + forward
# ---------------------------------------------------------------------------
def prepare_params(w_pt, b_pt):
    """PyTorch conv layout (Cout, Cin, kh, kw) -> matmul layout (K, Cout),
    Cout zero-padded to a sublane multiple (8) and cast to bf16.  Done ONCE,
    outside the jitted forward."""
    co, ci, kh, kw = w_pt.shape
    k = ci * kh * kw
    co_pad = _round_up(co, CO_PAD_TO)
    w_mm = jnp.transpose(w_pt.reshape(co, k), (1, 0))                  # (K, Cout)
    w_mm = jnp.pad(w_mm, ((0, 0), (0, co_pad - co))).astype(jnp.bfloat16)
    b_row = jnp.pad(b_pt, (0, co_pad - co)).reshape(1, co_pad).astype(jnp.float32)
    return w_mm, b_row


@functools.partial(jax.jit, static_argnums=(3,))
def dhead_forward(x_nchw, w_mm, b_row, cout):
    """Matches DHead.forward: sigmoid(Conv2d(256, 1, 4)(x)).  NCHW in/out.

    Valid for the DHead spec shape: spatial extent == kernel extent (4x4), so
    the conv output is 1x1 and the patch matrix is just the flattened input.
    """
    n, c, h, w = x_nchw.shape
    # TODO(synk): this reshape shortcut assumes H == W == 4 (the DHead spec);
    # a general stride-1 conv would need a real im2col / windowed DMA.
    assert (h, w) == (4, 4), "DHead expects 256-channel 4x4 feature maps"
    k = c * h * w
    assert k == w_mm.shape[0]

    p = x_nchw.reshape(n, k).astype(jnp.float32)    # zero-copy, K order = (Cin,kh,kw)

    m = n
    n_tiles = _cdiv(m, TM_MAX)
    if m >= 16 and n_tiles < 2:
        n_tiles = 2                                 # give v7x's 2 TCs >=1 tile each
    tm = _round_up(_cdiv(m, n_tiles), SUBLANE)      # balanced tiles, <=7 pad rows
    m_pad = n_tiles * tm
    if m_pad != m:
        p = jnp.pad(p, ((0, m_pad - m), (0, 0)))

    y = conv_sigmoid_tiled(p, w_mm, b_row, tm)      # (m_pad, co_pad) f32
    return y[:m, :cout].reshape(n, cout, 1, 1)      # NCHW, oh = ow = 1


if __name__ == "__main__":
    key = jax.random.PRNGKey(0)
    kx, kw_, kb_ = jax.random.split(key, 3)
    # DHead expects 256-channel 4x4 feature maps (conv k4, no pad -> 1x1).
    x = jax.random.normal(kx, (2, 256, 4, 4), jnp.float32)             # NCHW
    w = 0.05 * jax.random.normal(kw_, (1, 256, 4, 4), jnp.float32)     # (Cout,Cin,kh,kw)
    b = 0.05 * jax.random.normal(kb_, (1,), jnp.float32)

    w_mm, b_row = prepare_params(w, b)
    out = dhead_forward(x, w_mm, b_row, 1)
    out = jax.block_until_ready(out)
    assert out.shape == (2, 1, 1, 1), out.shape
    assert out.dtype == jnp.float32

    # f32 reference check (loose tolerance: kernel uses bf16 MXU inputs with
    # f32 accumulation).
    ref = jax.nn.sigmoid(
        jax.lax.conv_general_dilated(
            x, w, window_strides=(1, 1), padding="VALID",
            dimension_numbers=("NCHW", "OIHW", "NCHW"))
        + b.reshape(1, 1, 1, 1))
    assert float(jnp.max(jnp.abs(out - ref))) < 5e-2
    print("KERNEL_OK")
</pallas_src>

<mosaic_0001>
module attributes {stable_mosaic.version = 11 : i64} {
  func.func @conv_bias_sigmoid_kernel(%arg0: i32, %arg1: memref<8x4096xf32, #tpu.memory_space<vmem>>, %arg2: memref<4096x8xbf16, #tpu.memory_space<vmem>>, %arg3: memref<1x8xf32, #tpu.memory_space<vmem>>, %arg4: memref<8x8xf32, #tpu.memory_space<vmem>>) attributes {dimension_semantics = [#tpu.dimension_semantics<parallel>], iteration_bounds = array<i64: 1>, scalar_prefetch = 0 : i64, scratch_operands = 0 : i64, tpu.core_type = #tpu.core_type<tc>, window_params = [{transform_indices = @transform_0, window_bounds = array<i64: 8, 4096>}, {pipeline_mode = #tpu.pipeline_mode<synchronous>, transform_indices = @transform_1, window_bounds = array<i64: 4096, 8>}, {pipeline_mode = #tpu.pipeline_mode<synchronous>, transform_indices = @transform_2, window_bounds = array<i64: 1, 8>}, {transform_indices = @transform_3, window_bounds = array<i64: 8, 8>}]} {
    %c0 = arith.constant 0 : index
    %c0_0 = arith.constant 0 : index
    %0 = vector.load %arg1[%c0, %c0_0] : memref<8x4096xf32, #tpu.memory_space<vmem>>, vector<8x4096xf32>
    %1 = arith.truncf %0 : vector<8x4096xf32> to vector<8x4096xbf16>
    %c0_1 = arith.constant 0 : index
    %c0_2 = arith.constant 0 : index
    %2 = vector.load %arg2[%c0_1, %c0_2] : memref<4096x8xbf16, #tpu.memory_space<vmem>>, vector<4096x8xbf16>
    %cst = arith.constant dense<0.000000e+00> : vector<8x8xf32>
    %3 = tpu.matmul %1, %2, %cst {dimension_numbers = #tpu.dot_dimension_numbers<[1], [0], [0], [1], [0, 0, 1, 1], [], []>} : vector<8x4096xbf16>, vector<4096x8xbf16>, vector<8x8xf32> -> vector<8x8xf32>
    %c0_3 = arith.constant 0 : index
    %c0_4 = arith.constant 0 : index
    %4 = vector.load %arg3[%c0_3, %c0_4] : memref<1x8xf32, #tpu.memory_space<vmem>>, vector<1x8xf32>
    %5 = vector.broadcast %4 : vector<1x8xf32> to vector<8x8xf32>
    %6 = arith.addf %3, %5 : vector<8x8xf32>
    %7 = arith.negf %6 : vector<8x8xf32>
    %8 = math.exp %7 : vector<8x8xf32>
    %cst_5 = arith.constant 1.000000e+00 : f32
    %9 = vector.broadcast %cst_5 : f32 to vector<8x8xf32>
    %10 = arith.addf %9, %8 : vector<8x8xf32>
    %11 = arith.divf %9, %10 : vector<8x8xf32>
    %c0_6 = arith.constant 0 : index
    %c0_7 = arith.constant 0 : index
    %12 = vector.load %arg4[%c0_6, %c0_7] : memref<8x8xf32, #tpu.memory_space<vmem>>, vector<8x8xf32>
    tpu.vector_store %arg4[%c0_6, %c0_7], %11 {strides = array<i32>} : memref<8x8xf32, #tpu.memory_space<vmem>>, vector<8x8xf32>,
    return
  }
  func.func @transform_0(%arg0: i32) -> (i32, i32) {
    %c0_i32 = arith.constant 0 : i32
    %c0_i32_0 = arith.constant 0 : i32
    return %arg0, %c0_i32 : i32, i32
  }
  func.func @transform_1(%arg0: i32) -> (i32, i32) {
    %c0_i32 = arith.constant 0 : i32
    %c0_i32_0 = arith.constant 0 : i32
    %c0_i32_1 = arith.constant 0 : i32
    return %c0_i32, %c0_i32_0 : i32, i32
  }
  func.func @transform_2(%arg0: i32) -> (i32, i32) {
    %c0_i32 = arith.constant 0 : i32
    %c0_i32_0 = arith.constant 0 : i32
    %c0_i32_1 = arith.constant 0 : i32
    return %c0_i32, %c0_i32_0 : i32, i32
  }
  func.func @transform_3(%arg0: i32) -> (i32, i32) {
    %c0_i32 = arith.constant 0 : i32
    %c0_i32_0 = arith.constant 0 : i32
    return %arg0, %c0_i32 : i32, i32
  }
}

</mosaic_0001>

<bundles_post_ra>
// kernel: dhead_forward.1
= control target key start
LH: loop header
LB: loop body
LE: loop exit
PB: predicated region body
PF: predicated region fallthrough
CT: control target
= control target key end

     0   :  { %vm2780_vm0 = vcmask 64512   ;;  %s4546_s1 = inlined_call_operand.vmem [shape: bf16[4096,8], index: 1, kind: input, shape index: {}]   ;;  %s4547_s0 = inlined_call_operand.vmem [shape: f32[8,4096], index: 0, kind: input, shape index: {}]   ;;  %s4548_s2 = inlined_call_operand.vmem [shape: f32[1,8], index: 2, kind: input, shape index: {}]   ;;  %s4549_s3 = inlined_call_operand.vmem [shape: f32[8,8], index: 3, kind: output, shape index: {}]  }
   0x1   :  { %v3396_v0 = vld [vmem:[%s4546_s1 + $0x40] sm:$0xff]   ;;  %v3400_v4 = vld [vmem:[%s4546_s1 + $0x48] sm:$0xff]   ;;  %v3404_v8 = vld [vmem:[%s4546_s1 + $0x50] sm:$0xff]  }
   0x2   :  { %v3397_v1 = vld [vmem:[%s4546_s1 + $0xc0] sm:$0xff]   ;;  %3044 = vmatprep.subr.bf16.mxu0 %v3396_v0  ;;  %v3401_v5 = vld [vmem:[%s4546_s1 + $0xc8] sm:$0xff]   ;;  %v3405_v9 = vld [vmem:[%s4546_s1 + $0xd0] sm:$0xff]  }
   0x3   :  { %v3398_v2 = vld [vmem:[%s4546_s1] sm:$0xff]   ;;  %3066 = vmatprep.subr.bf16.mxu1 %v3397_v1  ;;  %v3402_v6 = vld [vmem:[%s4546_s1 + $0x8] sm:$0xff]   ;;  %v3406_v10 = vld [vmem:[%s4546_s1 + $0x10] sm:$0xff]  }
   0x4   :  { %v3399_v3 = vld [vmem:[%s4546_s1 + $0x80] sm:$0xff]   ;;  %3045 = vmatpush3.bf16.msra.mxu0 %v3398_v2  ;;  %v3403_v7 = vld [vmem:[%s4546_s1 + $0x88] sm:$0xff]   ;;  %v3407_v11 = vld [vmem:[%s4546_s1 + $0x90] sm:$0xff]  }
   0x5   :  { %3067 = vmatpush3.bf16.msra.mxu1 %v3399_v3  ;;  %3046 = vmatprep.subr.bf16.mxu0 %v3400_v4  ;;  %v3408_v12 = vld [vmem:[%s4546_s1 + $0x58] sm:$0xff]   ;;  %v3412_v16 = vld [vmem:[%s4546_s1 + $0x60] sm:$0xff]   ;;  %v3416_v20 = vld [vmem:[%s4546_s1 + $0x68] sm:$0xff]  }
   0x6   :  { %3068 = vmatprep.subr.bf16.mxu1 %v3401_v5  ;;  %v3409_v13 = vld [vmem:[%s4546_s1 + $0xd8] sm:$0xff]   ;;  %v3413_v17 = vld [vmem:[%s4546_s1 + $0xe0] sm:$0xff]   ;;  %v3417_v21 = vld [vmem:[%s4546_s1 + $0xe8] sm:$0xff]  }
   0x7   :  { %v3410_v14 = vld [vmem:[%s4546_s1 + $0x18] sm:$0xff]   ;;  %v3414_v18 = vld [vmem:[%s4546_s1 + $0x20] sm:$0xff]   ;;  %v3418_v22 = vld [vmem:[%s4546_s1 + $0x28] sm:$0xff]  }
   0x8   :  { %3047 = vmatpush3.bf16.msra.mxu0 %v3402_v6  ;;  %v3411_v15 = vld [vmem:[%s4546_s1 + $0x98] sm:$0xff]   ;;  %v3415_v19 = vld [vmem:[%s4546_s1 + $0xa0] sm:$0xff]   ;;  %v3419_v23 = vld [vmem:[%s4546_s1 + $0xa8] sm:$0xff]  }
   0x9   :  { %3069 = vmatpush3.bf16.msra.mxu1 %v3403_v7  ;;  %3048 = vmatprep.subr.bf16.mxu0 %v3404_v8  ;;  %v3420_v24 = vld [vmem:[%s4546_s1 + $0x70] sm:$0xff]   ;;  %v3424_v28 = vld [vmem:[%s4546_s1 + $0x78] sm:$0xff]   ;;  %v16_v32 = vld [vmem:[%s4547_s0 + $0x8] sm:$0xff] }
   0xa   :  { %3070 = vmatprep.subr.bf16.mxu1 %v3405_v9  ;;  %v3421_v25 = vld [vmem:[%s4546_s1 + $0xf0] sm:$0xff]   ;;  %v3425_v29 = vld [vmem:[%s4546_s1 + $0xf8] sm:$0xff]   ;;  %v15_v34 = vld [vmem:[%s4547_s0] sm:$0xff]  ;;  %v48_v35 = vpack.c.bf16 %v16_v32, %v16_v32 }
   0xb   :  { %v3422_v26 = vld [vmem:[%s4546_s1 + $0x30] sm:$0xff]   ;;  %v3426_v30 = vld [vmem:[%s4546_s1 + $0x38] sm:$0xff]   ;;  %v47_v37 = vpack.c.bf16 %v15_v34, %v15_v34  ;;  %v3428_v40 = vld [vmem:[%s4546_s1 + $0x140] sm:$0xff]  }
   0xc   :  { %3049 = vmatpush3.bf16.msra.mxu0 %v3406_v10  ;;  %v3423_v27 = vld [vmem:[%s4546_s1 + $0xb0] sm:$0xff]   ;;  %v3427_v31 = vld [vmem:[%s4546_s1 + $0xb8] sm:$0xff]   ;;  %2166 = vmatprep.mubr.bf16.mxu0 %v48_v35  ;;  %v3429_v41 = vld [vmem:[%s4546_s1 + $0x1c0] sm:$0xff]  }
   0xd   :  { %3071 = vmatpush3.bf16.msra.mxu1 %v3407_v11  ;;  %3050 = vmatprep.subr.bf16.mxu0 %v3408_v12  ;;  %v18_v33 = vld [vmem:[%s4547_s0 + $0x18] sm:$0xff]  ;;  %v17_v38 = vld [vmem:[%s4547_s0 + $0x10] sm:$0xff]  ;;  %v3430_v42 = vld [vmem:[%s4546_s1 + $0x100] sm:$0xff]  }
   0xe   :  { %3072 = vmatprep.subr.bf16.mxu1 %v3409_v13  ;;  %v50_v36 = vpack.c.bf16 %v18_v33, %v18_v33  ;;  %v49_v39 = vpack.c.bf16 %v17_v38, %v17_v38  ;;  %v3431_v43 = vld [vmem:[%s4546_s1 + $0x180] sm:$0xff]   ;;  %v3432_v44 = vld [vmem:[%s4546_s1 + $0x148] sm:$0xff]   ;;  %v3436_v48 = vld [vmem:[%s4546_s1 + $0x150] sm:$0xff]  }
   0xf   :  { %v3433_v45 = vld [vmem:[%s4546_s1 + $0x1c8] sm:$0xff]   ;;  %v3437_v49 = vld [vmem:[%s4546_s1 + $0x1d0] sm:$0xff]   ;;  %v3440_v52 = vld [vmem:[%s4546_s1 + $0x158] sm:$0xff]  }
  0x10   :  { %3051 = vmatpush3.bf16.msra.mxu0 %v3410_v14  ;;  %2206 = vmatprep.mubr.bf16.mxu1 %v50_v36  ;;  %v3434_v46 = vld [vmem:[%s4546_s1 + $0x108] sm:$0xff]   ;;  %v3438_v50 = vld [vmem:[%s4546_s1 + $0x110] sm:$0xff]   ;;  %v3441_v53 = vld [vmem:[%s4546_s1 + $0x1d8] sm:$0xff]  }
  0x11   :  { %3073 = vmatpush3.bf16.msra.mxu1 %v3411_v15  ;;  %3052 = vmatprep.subr.bf16.mxu0 %v3412_v16  ;;  %v3435_v47 = vld [vmem:[%s4546_s1 + $0x188] sm:$0xff]   ;;  %v3439_v51 = vld [vmem:[%s4546_s1 + $0x190] sm:$0xff]   ;;  %v3442_v54 = vld [vmem:[%s4546_s1 + $0x118] sm:$0xff]  }
  0x12   :  { %3074 = vmatprep.subr.bf16.mxu1 %v3413_v17  ;;  %v3443_v55 = vld [vmem:[%s4546_s1 + $0x198] sm:$0xff]   ;;  %v3444_v56 = vld [vmem:[%s4546_s1 + $0x160] sm:$0xff]   ;;  %v3448_v60 = vld [vmem:[%s4546_s1 + $0x168] sm:$0xff]  }
  0x13   :  { %v3445_v57 = vld [vmem:[%s4546_s1 + $0x1e0] sm:$0xff]   ;;  %v3449_v61 = vld [vmem:[%s4546_s1 + $0x1e8] sm:$0xff]   ;;  %v3452_v0 = vld [vmem:[%s4546_s1 + $0x170] sm:$0xff]  }
  0x14   :  { %3053 = vmatpush3.bf16.msra.mxu0 %v3414_v18  ;;  %v3446_v58 = vld [vmem:[%s4546_s1 + $0x120] sm:$0xff]   ;;  %v3450_v62 = vld [vmem:[%s4546_s1 + $0x128] sm:$0xff]   ;;  %v3453_v1 = vld [vmem:[%s4546_s1 + $0x1f0] sm:$0xff]  }
  0x15   :  { %3075 = vmatpush3.bf16.msra.mxu1 %v3415_v19  ;;  %3054 = vmatprep.subr.bf16.mxu0 %v3416_v20  ;;  %v3447_v59 = vld [vmem:[%s4546_s1 + $0x1a0] sm:$0xff]   ;;  %v3451_v63 = vld [vmem:[%s4546_s1 + $0x1a8] sm:$0xff]   ;;  %v3454_v2 = vld [vmem:[%s4546_s1 + $0x130] sm:$0xff]  }
  0x16   :  { %3076 = vmatprep.subr.bf16.mxu1 %v3417_v21  ;;  %v3455_v3 = vld [vmem:[%s4546_s1 + $0x1b0] sm:$0xff]   ;;  %v3456_v4 = vld [vmem:[%s4546_s1 + $0x178] sm:$0xff]   ;;  %v20_v8 = vld [vmem:[%s4547_s0 + $0x28] sm:$0xff] }
  0x17   :  { %v3457_v5 = vld [vmem:[%s4546_s1 + $0x1f8] sm:$0xff]   ;;  %v52_v10 = vpack.c.bf16 %v20_v8, %v20_v8  ;;  %v19_v12 = vld [vmem:[%s4547_s0 + $0x20] sm:$0xff]  ;;  %v21_v13 = vld [vmem:[%s4547_s0 + $0x30] sm:$0xff] }
  0x18   :  { %3055 = vmatpush3.bf16.msra.mxu0 %v3418_v22  ;;  %v3458_v6 = vld [vmem:[%s4546_s1 + $0x138] sm:$0xff]   ;;  %v51_v14 = vpack.c.bf16 %v19_v12, %v19_v12  ;;  %v53_v15 = vpack.c.bf16 %v21_v13, %v21_v13  ;;  %v3460_v16 = vld [vmem:[%s4546_s1 + $0x240] sm:$0xff]   ;;  %v3464_v20 = vld [vmem:[%s4546_s1 + $0x248] sm:$0xff]  }
  0x19   :  { %3077 = vmatpush3.bf16.msra.mxu1 %v3419_v23  ;;  %3056 = vmatprep.subr.bf16.mxu0 %v3420_v24  ;;  %v3459_v7 = vld [vmem:[%s4546_s1 + $0x1b8] sm:$0xff]   ;;  %v3461_v17 = vld [vmem:[%s4546_s1 + $0x2c0] sm:$0xff]   ;;  %v3465_v21 = vld [vmem:[%s4546_s1 + $0x2c8] sm:$0xff]  }
  0x1a   :  { %3078 = vmatprep.subr.bf16.mxu1 %v3421_v25  ;;  %v22_v9 = vld [vmem:[%s4547_s0 + $0x38] sm:$0xff]  ;;  %v3462_v18 = vld [vmem:[%s4546_s1 + $0x200] sm:$0xff]   ;;  %v3466_v22 = vld [vmem:[%s4546_s1 + $0x208] sm:$0xff]  }
  0x1b   :  { %v54_v11 = vpack.c.bf16 %v22_v9, %v22_v9  ;;  %v3463_v19 = vld [vmem:[%s4546_s1 + $0x280] sm:$0xff]   ;;  %v3467_v23 = vld [vmem:[%s4546_s1 + $0x288] sm:$0xff]   ;;  %v3468_v24 = vld [vmem:[%s4546_s1 + $0x250] sm:$0xff]  }
  0x1c   :  { %3057 = vmatpush3.bf16.msra.mxu0 %v3422_v26  ;;  %v3469_v25 = vld [vmem:[%s4546_s1 + $0x2d0] sm:$0xff]   ;;  %v3476_v32 = vld [vmem:[%s4546_s1 + $0x260] sm:$0xff]   ;;  %v3480_v36 = vld [vmem:[%s4546_s1 + $0x268] sm:$0xff]  }
  0x1d   :  { %3079 = vmatpush3.bf16.msra.mxu1 %v3423_v27  ;;  %3058 = vmatprep.subr.bf16.mxu0 %v3424_v28  ;;  %v3470_v26 = vld [vmem:[%s4546_s1 + $0x210] sm:$0xff]   ;;  %v3472_v28 = vld [vmem:[%s4546_s1 + $0x258] sm:$0xff]   ;;  %v3477_v33 = vld [vmem:[%s4546_s1 + $0x2e0] sm:$0xff]  }
  0x1e   :  { %3080 = vmatprep.subr.bf16.mxu1 %v3425_v29  ;;  %v3471_v27 = vld [vmem:[%s4546_s1 + $0x290] sm:$0xff]   ;;  %v3473_v29 = vld [vmem:[%s4546_s1 + $0x2d8] sm:$0xff]   ;;  %v3478_v34 = vld [vmem:[%s4546_s1 + $0x220] sm:$0xff]  }
  0x1f   :  { %v3479_v35 = vld [vmem:[%s4546_s1 + $0x2a0] sm:$0xff]   ;;  %v3482_v38 = vld [vmem:[%s4546_s1 + $0x228] sm:$0xff]  }
  0x20   :  { %3059 = vmatpush3.bf16.msra.mxu0 %v3426_v30  ;;  %v3474_v30 = vld [vmem:[%s4546_s1 + $0x218] sm:$0xff]   ;;  %v3508_v8 = vld [vmem:[%s4546_s1 + $0x360] sm:$0xff]   ;;  %v3512_v12 = vld [vmem:[%s4546_s1 + $0x368] sm:$0xff]  }
  0x21   :  { %3081 = vmatpush3.bf16.msra.mxu1 %v3427_v31  ;;  %3088 = vmatprep.subr.bf16.mxu0 %v3428_v40  ;;  %v3475_v31 = vld [vmem:[%s4546_s1 + $0x298] sm:$0xff]   ;;  %v3484_v40 = vld [vmem:[%s4546_s1 + $0x270] sm:$0xff]   ;;  %v3509_v9 = vld [vmem:[%s4546_s1 + $0x3e0] sm:$0xff]  }
  0x22   :  { %3110 = vmatprep.subr.bf16.mxu1 %v3429_v41  ;;  %v3485_v41 = vld [vmem:[%s4546_s1 + $0x2f0] sm:$0xff]   ;;  %v3513_v13 = vld [vmem:[%s4546_s1 + $0x3e8] sm:$0xff]  }
  0x23   :  { %2167 = vmatmul.mubr.bf16.vlgmr.msra.gmra.mrb[0].mxu0 %v47_v37  ;;  %v3481_v37 = vld [vmem:[%s4546_s1 + $0x2e8] sm:$0xff]  }
  0x24   :  { %2207 = vmatmul.mubr.bf16.vlgmr.msra.gmra.mrb[0].mxu1 %v49_v39  ;;  %3089 = vmatpush3.bf16.msra.mxu0 %v3430_v42  ;;  %v3483_v39 = vld [vmem:[%s4546_s1 + $0x2a8] sm:$0xff]   ;;  %v3486_v42 = vld [vmem:[%s4546_s1 + $0x230] sm:$0xff]  }
  0x25   :  { %3111 = vmatpush3.bf16.msra.mxu1 %v3431_v43  ;;  %3090 = vmatprep.subr.bf16.mxu0 %v3432_v44  ;;  %v3487_v43 = vld [vmem:[%s4546_s1 + $0x2b0] sm:$0xff]   ;;  %v3488_v44 = vld [vmem:[%s4546_s1 + $0x278] sm:$0xff]  }
  0x26   :  { %3112 = vmatprep.subr.bf16.mxu1 %v3433_v45  ;;  %2246 = vmatprep.mubr.bf16.mxu0 %v52_v10  ;;  %v3489_v45 = vld [vmem:[%s4546_s1 + $0x2f8] sm:$0xff]   ;;  %v3510_v10 = vld [vmem:[%s4546_s1 + $0x320] sm:$0xff]  }
  0x27   :  { %2286 = vmatprep.mubr.bf16.mxu1 %v54_v11  ;;  %v3511_v11 = vld [vmem:[%s4546_s1 + $0x3a0] sm:$0xff]  }
  0x28   :  { %3091 = vmatpush3.bf16.msra.mxu0 %v3434_v46  ;;  %v3490_v46 = vld [vmem:[%s4546_s1 + $0x238] sm:$0xff]  }
  0x29   :  { %3113 = vmatpush3.bf16.msra.mxu1 %v3435_v47  ;;  %3092 = vmatprep.subr.bf16.mxu0 %v3436_v48  ;;  %v3491_v47 = vld [vmem:[%s4546_s1 + $0x2b8] sm:$0xff]   ;;  %v24_v48 = vld [vmem:[%s4547_s0 + $0x48] sm:$0xff] }
  0x2a   :  { %3114 = vmatprep.subr.bf16.mxu1 %v3437_v49  ;;  %v56_v49 = vpack.c.bf16 %v24_v48, %v24_v48  ;;  %v3540_v48 = vld [vmem:[%s4546_s1 + $0x460] sm:$0xff]  }
  0x2c   :  { %3093 = vmatpush3.bf16.msra.mxu0 %v3438_v50  ;;  %v26_v50 = vld [vmem:[%s4547_s0 + $0x58] sm:$0xff] }
  0x2d   :  { %3115 = vmatpush3.bf16.msra.mxu1 %v3439_v51  ;;  %3094 = vmatprep.subr.bf16.mxu0 %v3440_v52  ;;  %v23_v51 = vld [vmem:[%s4547_s0 + $0x40] sm:$0xff]  ;;  %v25_v52 = vld [vmem:[%s4547_s0 + $0x50] sm:$0xff] }
  0x2e   :  { %3116 = vmatprep.subr.bf16.mxu1 %v3441_v53  ;;  %v58_v53 = vpack.c.bf16 %v26_v50, %v26_v50  ;;  %v3542_v50 = vld [vmem:[%s4546_s1 + $0x420] sm:$0xff]  }
  0x30   :  { %3095 = vmatpush3.bf16.msra.mxu0 %v3442_v54  ;;  %v55_v54 = vpack.c.bf16 %v23_v51, %v23_v51  ;;  %v3543_v51 = vld [vmem:[%s4546_s1 + $0x4a0] sm:$0xff]  }
  0x31   :  { %3117 = vmatpush3.bf16.msra.mxu1 %v3443_v55  ;;  %3096 = vmatprep.subr.bf16.mxu0 %v3444_v56  ;;  %v57_v55 = vpack.c.bf16 %v25_v52, %v25_v52  ;;  %v3492_v56 = vld [vmem:[%s4546_s1 + $0x340] sm:$0xff]   ;;  %v3544_v52 = vld [vmem:[%s4546_s1 + $0x468] sm:$0xff]  }
  0x32   :  { %3118 = vmatprep.subr.bf16.mxu1 %v3445_v57  ;;  %v3493_v57 = vld [vmem:[%s4546_s1 + $0x3c0] sm:$0xff]  }
  0x34   :  { %3097 = vmatpush3.bf16.msra.mxu0 %v3446_v58  ;;  %v3494_v58 = vld [vmem:[%s4546_s1 + $0x300] sm:$0xff]  }
  0x35   :  { %3119 = vmatpush3.bf16.msra.mxu1 %v3447_v59  ;;  %3098 = vmatprep.subr.bf16.mxu0 %v3448_v60  ;;  %v3495_v59 = vld [vmem:[%s4546_s1 + $0x380] sm:$0xff]   ;;  %v3496_v60 = vld [vmem:[%s4546_s1 + $0x348] sm:$0xff]  }
  0x36   :  { %3120 = vmatprep.subr.bf16.mxu1 %v3449_v61  ;;  %v3497_v61 = vld [vmem:[%s4546_s1 + $0x3c8] sm:$0xff]  }
  0x38   :  { %3099 = vmatpush3.bf16.msra.mxu0 %v3450_v62  ;;  %v3498_v62 = vld [vmem:[%s4546_s1 + $0x308] sm:$0xff]  }
  0x39   :  { %3121 = vmatpush3.bf16.msra.mxu1 %v3451_v63  ;;  %3100 = vmatprep.subr.bf16.mxu0 %v3452_v0  ;;  %v3499_v63 = vld [vmem:[%s4546_s1 + $0x388] sm:$0xff]   ;;  %v3500_v0 = vld [vmem:[%s4546_s1 + $0x350] sm:$0xff]  }
  0x3a   :  { %3122 = vmatprep.subr.bf16.mxu1 %v3453_v1  ;;  %v3501_v1 = vld [vmem:[%s4546_s1 + $0x3d0] sm:$0xff]  }
  0x3c   :  { %3101 = vmatpush3.bf16.msra.mxu0 %v3454_v2  ;;  %v3502_v2 = vld [vmem:[%s4546_s1 + $0x310] sm:$0xff]  }
  0x3d   :  { %3123 = vmatpush3.bf16.msra.mxu1 %v3455_v3  ;;  %3102 = vmatprep.subr.bf16.mxu0 %v3456_v4  ;;  %v3503_v3 = vld [vmem:[%s4546_s1 + $0x390] sm:$0xff]   ;;  %v3504_v4 = vld [vmem:[%s4546_s1 + $0x358] sm:$0xff]  }
  0x3e   :  { %3124 = vmatprep.subr.bf16.mxu1 %v3457_v5  ;;  %v3505_v5 = vld [vmem:[%s4546_s1 + $0x3d8] sm:$0xff]  }
  0x40   :  { %3103 = vmatpush3.bf16.msra.mxu0 %v3458_v6  ;;  %v3506_v6 = vld [vmem:[%s4546_s1 + $0x318] sm:$0xff]  }
  0x41   :  { %3125 = vmatpush3.bf16.msra.mxu1 %v3459_v7  ;;  %3132 = vmatprep.subr.bf16.mxu0 %v3460_v16  ;;  %v3507_v7 = vld [vmem:[%s4546_s1 + $0x398] sm:$0xff]   ;;  %v3516_v16 = vld [vmem:[%s4546_s1 + $0x370] sm:$0xff]  }
  0x42   :  { %3154 = vmatprep.subr.bf16.mxu1 %v3461_v17  ;;  %v3517_v17 = vld [vmem:[%s4546_s1 + $0x3f0] sm:$0xff]  }
  0x43   :  { %2247 = vmatmul.mubr.bf16.vlgmr.msra.gmra.mrb[4].mxu0 %v51_v14  ;;  %v3514_v14 = vld [vmem:[%s4546_s1 + $0x328] sm:$0xff]  }
  0x44   :  { %2287 = vmatmul.mubr.bf16.vlgmr.msra.gmra.mrb[4].mxu1 %v53_v15  ;;  %3133 = vmatpush3.bf16.msra.mxu0 %v3462_v18  ;;  %v3515_v15 = vld [vmem:[%s4546_s1 + $0x3a8] sm:$0xff]   ;;  %v3518_v18 = vld [vmem:[%s4546_s1 + $0x330] sm:$0xff]  }
  0x45   :  { %3155 = vmatpush3.bf16.msra.mxu1 %v3463_v19  ;;  %3134 = vmatprep.subr.bf16.mxu0 %v3464_v20  ;;  %v3519_v19 = vld [vmem:[%s4546_s1 + $0x3b0] sm:$0xff]   ;;  %v3520_v20 = vld [vmem:[%s4546_s1 + $0x378] sm:$0xff]  }
  0x46   :  { %3156 = vmatprep.subr.bf16.mxu1 %v3465_v21  ;;  %2326 = vmatprep.mubr.bf16.mxu0 %v56_v49  ;;  %v3521_v21 = vld [vmem:[%s4546_s1 + $0x3f8] sm:$0xff]   ;;  %v3541_v49 = vld [vmem:[%s4546_s1 + $0x4e0] sm:$0xff]  }
  0x47   :  { %2366 = vmatprep.mubr.bf16.mxu1 %v58_v53  ;;  %v3545_v53 = vld [vmem:[%s4546_s1 + $0x4e8] sm:$0xff]  }
  0x48   :  { %3135 = vmatpush3.bf16.msra.mxu0 %v3466_v22  ;;  %v3522_v22 = vld [vmem:[%s4546_s1 + $0x338] sm:$0xff]  }
  0x49   :  { %3157 = vmatpush3.bf16.msra.mxu1 %v3467_v23  ;;  %3136 = vmatprep.subr.bf16.mxu0 %v3468_v24  ;;  %v3523_v23 = vld [vmem:[%s4546_s1 + $0x3b8] sm:$0xff]   ;;  %v28_v24 = vld [vmem:[%s4547_s0 + $0x68] sm:$0xff] }
  0x4a   :  { %3158 = vmatprep.subr.bf16.mxu1 %v3469_v25  ;;  %v30_v25 = vld [vmem:[%s4547_s0 + $0x78] sm:$0xff] }
  0x4c   :  { %3137 = vmatpush3.bf16.msra.mxu0 %v3470_v26  ;;  %v27_v26 = vld [vmem:[%s4547_s0 + $0x60] sm:$0xff] }
  0x4d   :  { %3159 = vmatpush3.bf16.msra.mxu1 %v3471_v27  ;;  %3138 = vmatprep.subr.bf16.mxu0 %v3472_v28  ;;  %v60_v27 = vpack.c.bf16 %v28_v24, %v28_v24  ;;  %v62_v28 = vpack.c.bf16 %v30_v25, %v30_v25  ;;  %v3572_v24 = vld [vmem:[%s4546_s1 + $0x560] sm:$0xff]  }
  0x4e   :  { %3160 = vmatprep.subr.bf16.mxu1 %v3473_v29  ;;  %v59_v29 = vpack.c.bf16 %v27_v26, %v27_v26  ;;  %v3573_v25 = vld [vmem:[%s4546_s1 + $0x5e0] sm:$0xff]  }
  0x4f   :  { %v3574_v26 = vld [vmem:[%s4546_s1 + $0x520] sm:$0xff]  }
  0x50   :  { %3139 = vmatpush3.bf16.msra.mxu0 %v3474_v30  ;;  %v29_v30 = vld [vmem:[%s4547_s0 + $0x70] sm:$0xff] }
  0x51   :  { %3161 = vmatpush3.bf16.msra.mxu1 %v3475_v31  ;;  %3140 = vmatprep.subr.bf16.mxu0 %v3476_v32  ;;  %v61_v31 = vpack.c.bf16 %v29_v30, %v29_v30  ;;  %v3524_v32 = vld [vmem:[%s4546_s1 + $0x440] sm:$0xff]   ;;  %v3578_v30 = vld [vmem:[%s4546_s1 + $0x528] sm:$0xff]  }
  0x52   :  { %3162 = vmatprep.subr.bf16.mxu1 %v3477_v33  ;;  %v3525_v33 = vld [vmem:[%s4546_s1 + $0x4c0] sm:$0xff]  }
  0x54   :  { %3141 = vmatpush3.bf16.msra.mxu0 %v3478_v34  ;;  %v3526_v34 = vld [vmem:[%s4546_s1 + $0x400] sm:$0xff]  }
  0x55   :  { %3163 = vmatpush3.bf16.msra.mxu1 %v3479_v35  ;;  %3142 = vmatprep.subr.bf16.mxu0 %v3480_v36  ;;  %v3527_v35 = vld [vmem:[%s4546_s1 + $0x480] sm:$0xff]   ;;  %v3528_v36 = vld [vmem:[%s4546_s1 + $0x448] sm:$0xff]  }
  0x56   :  { %3164 = vmatprep.subr.bf16.mxu1 %v3481_v37  ;;  %v3529_v37 = vld [vmem:[%s4546_s1 + $0x4c8] sm:$0xff]  }
  0x58   :  { %3143 = vmatpush3.bf16.msra.mxu0 %v3482_v38  ;;  %v3530_v38 = vld [vmem:[%s4546_s1 + $0x408] sm:$0xff]  }
  0x59   :  { %3165 = vmatpush3.bf16.msra.mxu1 %v3483_v39  ;;  %3144 = vmatprep.subr.bf16.mxu0 %v3484_v40  ;;  %v3531_v39 = vld [vmem:[%s4546_s1 + $0x488] sm:$0xff]   ;;  %v3532_v40 = vld [vmem:[%s4546_s1 + $0x450] sm:$0xff]  }
  0x5a   :  { %3166 = vmatprep.subr.bf16.mxu1 %v3485_v41  ;;  %v3533_v41 = vld [vmem:[%s4546_s1 + $0x4d0] sm:$0xff]  }
  0x5c   :  { %3145 = vmatpush3.bf16.msra.mxu0 %v3486_v42  ;;  %v3534_v42 = vld [vmem:[%s4546_s1 + $0x410] sm:$0xff]  }
  0x5d   :  { %3167 = vmatpush3.bf16.msra.mxu1 %v3487_v43  ;;  %3146 = vmatprep.subr.bf16.mxu0 %v3488_v44  ;;  %v3535_v43 = vld [vmem:[%s4546_s1 + $0x490] sm:$0xff]   ;;  %v3536_v44 = vld [vmem:[%s4546_s1 + $0x458] sm:$0xff]  }
  0x5e   :  { %3168 = vmatprep.subr.bf16.mxu1 %v3489_v45  ;;  %v3537_v45 = vld [vmem:[%s4546_s1 + $0x4d8] sm:$0xff]  }
  0x60   :  { %3147 = vmatpush3.bf16.msra.mxu0 %v3490_v46  ;;  %v3538_v46 = vld [vmem:[%s4546_s1 + $0x418] sm:$0xff]  }
  0x61   :  { %3169 = vmatpush3.bf16.msra.mxu1 %v3491_v47  ;;  %3176 = vmatprep.subr.bf16.mxu0 %v3492_v56  ;;  %v3539_v47 = vld [vmem:[%s4546_s1 + $0x498] sm:$0xff]   ;;  %v3548_v56 = vld [vmem:[%s4546_s1 + $0x470] sm:$0xff]  }
  0x62   :  { %3198 = vmatprep.subr.bf16.mxu1 %v3493_v57  ;;  %v3549_v57 = vld [vmem:[%s4546_s1 + $0x4f0] sm:$0xff]  }
  0x63   :  { %2327 = vmatmul.mubr.bf16.vlgmr.msra.gmra.mrb[8].mxu0 %v55_v54  ;;  %v3546_v54 = vld [vmem:[%s4546_s1 + $0x428] sm:$0xff]  }
  0x64   :  { %2367 = vmatmul.mubr.bf16.vlgmr.msra.gmra.mrb[8].mxu1 %v57_v55  ;;  %3177 = vmatpush3.bf16.msra.mxu0 %v3494_v58  ;;  %v3547_v55 = vld [vmem:[%s4546_s1 + $0x4a8] sm:$0xff]   ;;  %v3550_v58 = vld [vmem:[%s4546_s1 + $0x430] sm:$0xff]  }
  0x65   :  { %3199 = vmatpush3.bf16.msra.mxu1 %v3495_v59  ;;  %3178 = vmatprep.subr.bf16.mxu0 %v3496_v60  ;;  %v3551_v59 = vld [vmem:[%s4546_s1 + $0x4b0] sm:$0xff]   ;;  %v3552_v60 = vld [vmem:[%s4546_s1 + $0x478] sm:$0xff]  }
  0x66   :  { %3200 = vmatprep.subr.bf16.mxu1 %v3497_v61  ;;  %2406 = vmatprep.mubr.bf16.mxu0 %v60_v27  ;;  %v3553_v61 = vld [vmem:[%s4546_s1 + $0x4f8] sm:$0xff]   ;;  %v3575_v27 = vld [vmem:[%s4546_s1 + $0x5a0] sm:$0xff]  }
  0x67   :  { %2446 = vmatprep.mubr.bf16.mxu1 %v62_v28  ;;  %v3576_v28 = vld [vmem:[%s4546_s1 + $0x568] sm:$0xff]  }
  0x68   :  { %3179 = vmatpush3.bf16.msra.mxu0 %v3498_v62  ;;  %v3554_v62 = vld [vmem:[%s4546_s1 + $0x438] sm:$0xff]  }
  0x69   :  { %3201 = vmatpush3.bf16.msra.mxu1 %v3499_v63  ;;  %3180 = vmatprep.subr.bf16.mxu0 %v3500_v0  ;;  %v3555_v63 = vld [vmem:[%s4546_s1 + $0x4b8] sm:$0xff]   ;;  %v32_v0 = vld [vmem:[%s4547_s0 + $0x88] sm:$0xff] }
  0x6a   :  { %3202 = vmatprep.subr.bf16.mxu1 %v3501_v1  ;;  %v34_v1 = vld [vmem:[%s4547_s0 + $0x98] sm:$0xff] }
  0x6c   :  { %3181 = vmatpush3.bf16.msra.mxu0 %v3502_v2  ;;  %v64_v2 = vpack.c.bf16 %v32_v0, %v32_v0  ;;  %v3604_v0 = vld [vmem:[%s4546_s1 + $0x660] sm:$0xff]  }
  0x6d   :  { %3203 = vmatpush3.bf16.msra.mxu1 %v3503_v3  ;;  %3182 = vmatprep.subr.bf16.mxu0 %v3504_v4  ;;  %v66_v3 = vpack.c.bf16 %v34_v1, %v34_v1  ;;  %v31_v4 = vld [vmem:[%s4547_s0 + $0x80] sm:$0xff] }
  0x6e   :  { %3204 = vmatprep.subr.bf16.mxu1 %v3505_v5  ;;  %v33_v5 = vld [vmem:[%s4547_s0 + $0x90] sm:$0xff]  ;;  %v3605_v1 = vld [vmem:[%s4546_s1 + $0x6e0] sm:$0xff]  }
  0x70   :  { %3183 = vmatpush3.bf16.msra.mxu0 %v3506_v6  ;;  %v63_v6 = vpack.c.bf16 %v31_v4, %v31_v4  ;;  %v3608_v4 = vld [vmem:[%s4546_s1 + $0x668] sm:$0xff]  }
  0x71   :  { %3205 = vmatpush3.bf16.msra.mxu1 %v3507_v7  ;;  %3184 = vmatprep.subr.bf16.mxu0 %v3508_v8  ;;  %v65_v7 = vpack.c.bf16 %v33_v5, %v33_v5  ;;  %v3556_v8 = vld [vmem:[%s4546_s1 + $0x540] sm:$0xff]   ;;  %v3609_v5 = vld [vmem:[%s4546_s1 + $0x6e8] sm:$0xff]  }
  0x72   :  { %3206 = vmatprep.subr.bf16.mxu1 %v3509_v9  ;;  %v3557_v9 = vld [vmem:[%s4546_s1 + $0x5c0] sm:$0xff]  }
  0x74   :  { %3185 = vmatpush3.bf16.msra.mxu0 %v3510_v10  ;;  %v3558_v10 = vld [vmem:[%s4546_s1 + $0x500] sm:$0xff]  }
  0x75   :  { %3207 = vmatpush3.bf16.msra.mxu1 %v3511_v11  ;;  %3186 = vmatprep.subr.bf16.mxu0 %v3512_v12  ;;  %v3559_v11 = vld [vmem:[%s4546_s1 + $0x580] sm:$0xff]   ;;  %v3560_v12 = vld [vmem:[%s4546_s1 + $0x548] sm:$0xff]  }
  0x76   :  { %3208 = vmatprep.subr.bf16.mxu1 %v3513_v13  ;;  %v3561_v13 = vld [vmem:[%s4546_s1 + $0x5c8] sm:$0xff]  }
  0x78   :  { %3187 = vmatpush3.bf16.msra.mxu0 %v3514_v14  ;;  %v3562_v14 = vld [vmem:[%s4546_s1 + $0x508] sm:$0xff]  }
  0x79   :  { %3209 = vmatpush3.bf16.msra.mxu1 %v3515_v15  ;;  %3188 = vmatprep.subr.bf16.mxu0 %v3516_v16  ;;  %v3563_v15 = vld [vmem:[%s4546_s1 + $0x588] sm:$0xff]   ;;  %v3564_v16 = vld [vmem:[%s4546_s1 + $0x550] sm:$0xff]  }
  0x7a   :  { %3210 = vmatprep.subr.bf16.mxu1 %v3517_v17  ;;  %v3565_v17 = vld [vmem:[%s4546_s1 + $0x5d0] sm:$0xff]  }
  0x7c   :  { %3189 = vmatpush3.bf16.msra.mxu0 %v3518_v18  ;;  %v3566_v18 = vld [vmem:[%s4546_s1 + $0x510] sm:$0xff]  }
  0x7d   :  { %3211 = vmatpush3.bf16.msra.mxu1 %v3519_v19  ;;  %3190 = vmatprep.subr.bf16.mxu0 %v3520_v20  ;;  %v3567_v19 = vld [vmem:[%s4546_s1 + $0x590] sm:$0xff]   ;;  %v3568_v20 = vld [vmem:[%s4546_s1 + $0x558] sm:$0xff]  }
  0x7e   :  { %3212 = vmatprep.subr.bf16.mxu1 %v3521_v21  ;;  %v3569_v21 = vld [vmem:[%s4546_s1 + $0x5d8] sm:$0xff]  }
  0x80   :  { %3191 = vmatpush3.bf16.msra.mxu0 %v3522_v22  ;;  %v3570_v22 = vld [vmem:[%s4546_s1 + $0x518] sm:$0xff]  }
  0x81   :  { %3213 = vmatpush3.bf16.msra.mxu1 %v3523_v23  ;;  %3220 = vmatprep.subr.bf16.mxu0 %v3524_v32  ;;  %v3571_v23 = vld [vmem:[%s4546_s1 + $0x598] sm:$0xff]   ;;  %v3580_v32 = vld [vmem:[%s4546_s1 + $0x570] sm:$0xff]  }
  0x82   :  { %3242 = vmatprep.subr.bf16.mxu1 %v3525_v33  ;;  %v3581_v33 = vld [vmem:[%s4546_s1 + $0x5f0] sm:$0xff]  }
  0x83   :  { %2407 = vmatmul.mubr.bf16.vlgmr.msra.gmra.mrb[12].mxu0 %v59_v29  ;;  %v3577_v29 = vld [vmem:[%s4546_s1 + $0x5e8] sm:$0xff]  }
  0x84   :  { %2447 = vmatmul.mubr.bf16.vlgmr.msra.gmra.mrb[12].mxu1 %v61_v31  ;;  %3221 = vmatpush3.bf16.msra.mxu0 %v3526_v34  ;;  %v3579_v31 = vld [vmem:[%s4546_s1 + $0x5a8] sm:$0xff]   ;;  %v3582_v34 = vld [vmem:[%s4546_s1 + $0x530] sm:$0xff]  }
  0x85   :  { %3243 = vmatpush3.bf16.msra.mxu1 %v3527_v35  ;;  %3222 = vmatprep.subr.bf16.mxu0 %v3528_v36  ;;  %v3583_v35 = vld [vmem:[%s4546_s1 + $0x5b0] sm:$0xff]   ;;  %v3584_v36 = vld [vmem:[%s4546_s1 + $0x578] sm:$0xff]  }
  0x86   :  { %3244 = vmatprep.subr.bf16.mxu1 %v3529_v37  ;;  %2486 = vmatprep.mubr.bf16.mxu0 %v64_v2  ;;  %v3585_v37 = vld [vmem:[%s4546_s1 + $0x5f8] sm:$0xff]   ;;  %v3606_v2 = vld [vmem:[%s4546_s1 + $0x620] sm:$0xff]  }
  0x87   :  { %2526 = vmatprep.mubr.bf16.mxu1 %v66_v3  ;;  %v3607_v3 = vld [vmem:[%s4546_s1 + $0x6a0] sm:$0xff]  }
  0x88   :  { %3223 = vmatpush3.bf16.msra.mxu0 %v3530_v38  ;;  %v3586_v38 = vld [vmem:[%s4546_s1 + $0x538] sm:$0xff]  }
  0x89   :  { %3245 = vmatpush3.bf16.msra.mxu1 %v3531_v39  ;;  %3224 = vmatprep.subr.bf16.mxu0 %v3532_v40  ;;  %v3587_v39 = vld [vmem:[%s4546_s1 + $0x5b8] sm:$0xff]   ;;  %v36_v40 = vld [vmem:[%s4547_s0 + $0xa8] sm:$0xff] }
  0x8a   :  { %3246 = vmatprep.subr.bf16.mxu1 %v3533_v41  ;;  %v68_v41 = vpack.c.bf16 %v36_v40, %v36_v40 }
  0x8c   :  { %3225 = vmatpush3.bf16.msra.mxu0 %v3534_v42  ;;  %v38_v42 = vld [vmem:[%s4547_s0 + $0xb8] sm:$0xff] }
  0x8d   :  { %3247 = vmatpush3.bf16.msra.mxu1 %v3535_v43  ;;  %3226 = vmatprep.subr.bf16.mxu0 %v3536_v44  ;;  %v35_v43 = vld [vmem:[%s4547_s0 + $0xa0] sm:$0xff]  ;;  %v37_v44 = vld [vmem:[%s4547_s0 + $0xb0] sm:$0xff] }
  0x8e   :  { %3248 = vmatprep.subr.bf16.mxu1 %v3537_v45  ;;  %v70_v45 = vpack.c.bf16 %v38_v42, %v38_v42 }
  0x90   :  { %3227 = vmatpush3.bf16.msra.mxu0 %v3538_v46  ;;  %v67_v46 = vpack.c.bf16 %v35_v43, %v35_v43  ;;  %v3636_v43 = vld [vmem:[%s4546_s1 + $0x760] sm:$0xff]  }
  0x91   :  { %3249 = vmatpush3.bf16.msra.mxu1 %v3539_v47  ;;  %3228 = vmatprep.subr.bf16.mxu0 %v3540_v48  ;;  %v69_v47 = vpack.c.bf16 %v37_v44, %v37_v44  ;;  %v3588_v48 = vld [vmem:[%s4546_s1 + $0x640] sm:$0xff]  }
  0x92   :  { %3250 = vmatprep.subr.bf16.mxu1 %v3541_v49  ;;  %v3589_v49 = vld [vmem:[%s4546_s1 + $0x6c0] sm:$0xff]  }
  0x94   :  { %3229 = vmatpush3.bf16.msra.mxu0 %v3542_v50  ;;  %v3590_v50 = vld [vmem:[%s4546_s1 + $0x600] sm:$0xff]  }
  0x95   :  { %3251 = vmatpush3.bf16.msra.mxu1 %v3543_v51  ;;  %3230 = vmatprep.subr.bf16.mxu0 %v3544_v52  ;;  %v3591_v51 = vld [vmem:[%s4546_s1 + $0x680] sm:$0xff]   ;;  %v3592_v52 = vld [vmem:[%s4546_s1 + $0x648] sm:$0xff]  }
  0x96   :  { %3252 = vmatprep.subr.bf16.mxu1 %v3545_v53  ;;  %v3593_v53 = vld [vmem:[%s4546_s1 + $0x6c8] sm:$0xff]  }
  0x98   :  { %3231 = vmatpush3.bf16.msra.mxu0 %v3546_v54  ;;  %v3594_v54 = vld [vmem:[%s4546_s1 + $0x608] sm:$0xff]  }
  0x99   :  { %3253 = vmatpush3.bf16.msra.mxu1 %v3547_v55  ;;  %3232 = vmatprep.subr.bf16.mxu0 %v3548_v56  ;;  %v3595_v55 = vld [vmem:[%s4546_s1 + $0x688] sm:$0xff]   ;;  %v3596_v56 = vld [vmem:[%s4546_s1 + $0x650] sm:$0xff]  }
  0x9a   :  { %3254 = vmatprep.subr.bf16.mxu1 %v3549_v57  ;;  %v3597_v57 = vld [vmem:[%s4546_s1 + $0x6d0] sm:$0xff]  }
  0x9c   :  { %3233 = vmatpush3.bf16.msra.mxu0 %v3550_v58  ;;  %v3598_v58 = vld [vmem:[%s4546_s1 + $0x610] sm:$0xff]  }
  0x9d   :  { %3255 = vmatpush3.bf16.msra.mxu1 %v3551_v59  ;;  %3234 = vmatprep.subr.bf16.mxu0 %v3552_v60  ;;  %v3599_v59 = vld [vmem:[%s4546_s1 + $0x690] sm:$0xff]   ;;  %v3600_v60 = vld [vmem:[%s4546_s1 + $0x658] sm:$0xff]  }
  0x9e   :  { %3256 = vmatprep.subr.bf16.mxu1 %v3553_v61  ;;  %v3601_v61 = vld [vmem:[%s4546_s1 + $0x6d8] sm:$0xff]  }
  0xa0   :  { %3235 = vmatpush3.bf16.msra.mxu0 %v3554_v62  ;;  %v3602_v62 = vld [vmem:[%s4546_s1 + $0x618] sm:$0xff]  }
  0xa1   :  { %3257 = vmatpush3.bf16.msra.mxu1 %v3555_v63  ;;  %3264 = vmatprep.subr.bf16.mxu0 %v3556_v8  ;;  %v3603_v63 = vld [vmem:[%s4546_s1 + $0x698] sm:$0xff]   ;;  %v3612_v8 = vld [vmem:[%s4546_s1 + $0x670] sm:$0xff]  }
  0xa2   :  { %3286 = vmatprep.subr.bf16.mxu1 %v3557_v9  ;;  %v3613_v9 = vld [vmem:[%s4546_s1 + $0x6f0] sm:$0xff]  }
  0xa3   :  { %2487 = vmatmul.mubr.bf16.vlgmr.msra.gmra.mrb[16].mxu0 %v63_v6  ;;  %v3610_v6 = vld [vmem:[%s4546_s1 + $0x628] sm:$0xff]  }
  0xa4   :  { %2527 = vmatmul.mubr.bf16.vlgmr.msra.gmra.mrb[16].mxu1 %v65_v7  ;;  %3265 = vmatpush3.bf16.msra.mxu0 %v3558_v10  ;;  %v3611_v7 = vld [vmem:[%s4546_s1 + $0x6a8] sm:$0xff]   ;;  %v3614_v10 = vld [vmem:[%s4546_s1 + $0x630] sm:$0xff]  }
  0xa5   :  { %3287 = vmatpush3.bf16.msra.mxu1 %v3559_v11  ;;  %3266 = vmatprep.subr.bf16.mxu0 %v3560_v12  ;;  %v3615_v11 = vld [vmem:[%s4546_s1 + $0x6b0] sm:$0xff]   ;;  %v3616_v12 = vld [vmem:[%s4546_s1 + $0x678] sm:$0xff]  }
  0xa6   :  { %3288 = vmatprep.subr.bf16.mxu1 %v3561_v13  ;;  %2566 = vmatprep.mubr.bf16.mxu0 %v68_v41  ;;  %v3617_v13 = vld [vmem:[%s4546_s1 + $0x6f8] sm:$0xff]  }
  0xa7   :  { %2606 = vmatprep.mubr.bf16.mxu1 %v70_v45  ;;  %v3635_v41 = vld [vmem:[%s4546_s1 + $0x798] sm:$0xff]  }
  0xa8   :  { %3267 = vmatpush3.bf16.msra.mxu0 %v3562_v14  ;;  %v3618_v14 = vld [vmem:[%s4546_s1 + $0x638] sm:$0xff]  }
  0xa9   :  { %3289 = vmatpush3.bf16.msra.mxu1 %v3563_v15  ;;  %3268 = vmatprep.subr.bf16.mxu0 %v3564_v16  ;;  %v3619_v15 = vld [vmem:[%s4546_s1 + $0x6b8] sm:$0xff]   ;;  %v40_v16 = vld [vmem:[%s4547_s0 + $0xc8] sm:$0xff] }
  0xaa   :  { %3290 = vmatprep.subr.bf16.mxu1 %v3565_v17  ;;  %v42_v17 = vld [vmem:[%s4547_s0 + $0xd8] sm:$0xff] }
  0xac   :  { %3269 = vmatpush3.bf16.msra.mxu0 %v3566_v18  ;;  %v39_v18 = vld [vmem:[%s4547_s0 + $0xc0] sm:$0xff] }
  0xad   :  { %3291 = vmatpush3.bf16.msra.mxu1 %v3567_v19  ;;  %3270 = vmatprep.subr.bf16.mxu0 %v3568_v20  ;;  %v72_v19 = vpack.c.bf16 %v40_v16, %v40_v16  ;;  %v74_v20 = vpack.c.bf16 %v42_v17, %v42_v17 }
  0xae   :  { %3292 = vmatprep.subr.bf16.mxu1 %v3569_v21  ;;  %v71_v21 = vpack.c.bf16 %v39_v18, %v39_v18 }
  0xb0   :  { %3271 = vmatpush3.bf16.msra.mxu0 %v3570_v22  ;;  %v41_v22 = vld [vmem:[%s4547_s0 + $0xd0] sm:$0xff] }
  0xb1   :  { %3293 = vmatpush3.bf16.msra.mxu1 %v3571_v23  ;;  %3272 = vmatprep.subr.bf16.mxu0 %v3572_v24  ;;  %v73_v23 = vpack.c.bf16 %v41_v22, %v41_v22  ;;  %v3620_v24 = vld [vmem:[%s4546_s1 + $0x740] sm:$0xff]  }
  0xb2   :  { %3294 = vmatprep.subr.bf16.mxu1 %v3573_v25  ;;  %v3621_v25 = vld [vmem:[%s4546_s1 + $0x7c0] sm:$0xff]  }
  0xb4   :  { %3273 = vmatpush3.bf16.msra.mxu0 %v3574_v26  ;;  %v3622_v26 = vld [vmem:[%s4546_s1 + $0x700] sm:$0xff]  }
  0xb5   :  { %3295 = vmatpush3.bf16.msra.mxu1 %v3575_v27  ;;  %3274 = vmatprep.subr.bf16.mxu0 %v3576_v28  ;;  %v3623_v27 = vld [vmem:[%s4546_s1 + $0x780] sm:$0xff]   ;;  %v3624_v28 = vld [vmem:[%s4546_s1 + $0x748] sm:$0xff]  }
  0xb6   :  { %3296 = vmatprep.subr.bf16.mxu1 %v3577_v29  ;;  %v3625_v29 = vld [vmem:[%s4546_s1 + $0x7c8] sm:$0xff]  }
  0xb8   :  { %3275 = vmatpush3.bf16.msra.mxu0 %v3578_v30  ;;  %v3626_v30 = vld [vmem:[%s4546_s1 + $0x708] sm:$0xff]  }
  0xb9   :  { %3297 = vmatpush3.bf16.msra.mxu1 %v3579_v31  ;;  %3276 = vmatprep.subr.bf16.mxu0 %v3580_v32  ;;  %v3627_v31 = vld [vmem:[%s4546_s1 + $0x788] sm:$0xff]   ;;  %v3628_v32 = vld [vmem:[%s4546_s1 + $0x750] sm:$0xff]  }
  0xba   :  { %3298 = vmatprep.subr.bf16.mxu1 %v3581_v33  ;;  %v3629_v33 = vld [vmem:[%s4546_s1 + $0x7d0] sm:$0xff]  }
  0xbc   :  { %3277 = vmatpush3.bf16.msra.mxu0 %v3582_v34  ;;  %v3630_v34 = vld [vmem:[%s4546_s1 + $0x710] sm:$0xff]  }
  0xbd   :  { %3299 = vmatpush3.bf16.msra.mxu1 %v3583_v35  ;;  %3278 = vmatprep.subr.bf16.mxu0 %v3584_v36  ;;  %v3631_v35 = vld [vmem:[%s4546_s1 + $0x790] sm:$0xff]   ;;  %v3632_v36 = vld [vmem:[%s4546_s1 + $0x758] sm:$0xff]  }
  0xbe   :  { %3300 = vmatprep.subr.bf16.mxu1 %v3585_v37  ;;  %v3633_v37 = vld [vmem:[%s4546_s1 + $0x7d8] sm:$0xff]  }
  0xc0   :  { %3279 = vmatpush3.bf16.msra.mxu0 %v3586_v38 }
  0xc1   :  { %3301 = vmatpush3.bf16.msra.mxu1 %v3587_v39  ;;  %3308 = vmatprep.subr.bf16.mxu0 %v3588_v48  ;;  %v3634_v39 = vld [vmem:[%s4546_s1 + $0x718] sm:$0xff]  }
  0xc2   :  { %3330 = vmatprep.subr.bf16.mxu1 %v3589_v49  ;;  %v3638_v49 = vld [vmem:[%s4546_s1 + $0x720] sm:$0xff]  }
  0xc3   :  { %2567 = vmatmul.mubr.bf16.vlgmr.msra.gmra.mrb[20].mxu0 %v67_v46  ;;  %v3637_v46 = vld [vmem:[%s4546_s1 + $0x7e0] sm:$0xff]  }
  0xc4   :  { %2607 = vmatmul.mubr.bf16.vlgmr.msra.gmra.mrb[20].mxu1 %v69_v47  ;;  %3309 = vmatpush3.bf16.msra.mxu0 %v3590_v50 }
  0xc5   :  { %3331 = vmatpush3.bf16.msra.mxu1 %v3591_v51  ;;  %3310 = vmatprep.subr.bf16.mxu0 %v3592_v52  ;;  %v3639_v51 = vld [vmem:[%s4546_s1 + $0x7a0] sm:$0xff]  }
  0xc6   :  { %3332 = vmatprep.subr.bf16.mxu1 %v3593_v53  ;;  %2646 = vmatprep.mubr.bf16.mxu0 %v72_v19  ;;  %v2786_v52 = vld [vmem:[%s4548_s2] ss:$0 sm:$0xff] }
  0xc7   :  { %2686 = vmatprep.mubr.bf16.mxu1 %v74_v20 }
  0xc8   :  { %3311 = vmatpush3.bf16.msra.mxu0 %v3594_v54 }
  0xc9   :  { %3333 = vmatpush3.bf16.msra.mxu1 %v3595_v55  ;;  %3312 = vmatprep.subr.bf16.mxu0 %v3596_v56  ;;  %v3640_v55 = vld [vmem:[%s4546_s1 + $0x768] sm:$0xff]  }
  0xca   :  { %3334 = vmatprep.subr.bf16.mxu1 %v3597_v57  ;;  %v3641_v57 = vld [vmem:[%s4546_s1 + $0x7e8] sm:$0xff]  }
  0xcc   :  { %3313 = vmatpush3.bf16.msra.mxu0 %v3598_v58 }
  0xcd   :  { %3335 = vmatpush3.bf16.msra.mxu1 %v3599_v59  ;;  %3314 = vmatprep.subr.bf16.mxu0 %v3600_v60  ;;  %v3642_v59 = vld [vmem:[%s4546_s1 + $0x728] sm:$0xff]  }
  0xce   :  { %3336 = vmatprep.subr.bf16.mxu1 %v3601_v61  ;;  %v3643_v60 = vld [vmem:[%s4546_s1 + $0x7a8] sm:$0xff]   ;;  %v3644_v61 = vld [vmem:[%s4546_s1 + $0x770] sm:$0xff]  }
  0xd0   :  { %3315 = vmatpush3.bf16.msra.mxu0 %v3602_v62  ;;  %v3645_v62 = vld [vmem:[%s4546_s1 + $0x7f0] sm:$0xff]  }
  0xd1   :  { %3337 = vmatpush3.bf16.msra.mxu1 %v3603_v63  ;;  %3316 = vmatprep.subr.bf16.mxu0 %v3604_v0  ;;  %v3646_v63 = vld [vmem:[%s4546_s1 + $0x730] sm:$0xff]  }
  0xd2   :  { %3338 = vmatprep.subr.bf16.mxu1 %v3605_v1  ;;  %v3647_v0 = vld [vmem:[%s4546_s1 + $0x7b0] sm:$0xff]   ;;  %v3648_v1 = vld [vmem:[%s4546_s1 + $0x778] sm:$0xff]  }
  0xd4   :  { %3317 = vmatpush3.bf16.msra.mxu0 %v3606_v2  ;;  %v3649_v2 = vld [vmem:[%s4546_s1 + $0x7f8] sm:$0xff]  }
  0xd5   :  { %3339 = vmatpush3.bf16.msra.mxu1 %v3607_v3  ;;  %3318 = vmatprep.subr.bf16.mxu0 %v3608_v4  ;;  %v3650_v3 = vld [vmem:[%s4546_s1 + $0x738] sm:$0xff]  }
  0xd6   :  { %3340 = vmatprep.subr.bf16.mxu1 %v3609_v5  ;;  %v3651_v4 = vld [vmem:[%s4546_s1 + $0x7b8] sm:$0xff]   ;;  %v44_v5 = vld [vmem:[%s4547_s0 + $0xe8] sm:$0xff] }
  0xd8   :  { %3319 = vmatpush3.bf16.msra.mxu0 %v3610_v6  ;;  %v76_v6 = vpack.c.bf16 %v44_v5, %v44_v5 }
  0xd9   :  { %3341 = vmatpush3.bf16.msra.mxu1 %v3611_v7  ;;  %3320 = vmatprep.subr.bf16.mxu0 %v3612_v8  ;;  %v46_v7 = vld [vmem:[%s4547_s0 + $0xf8] sm:$0xff]  ;;  %v43_v8 = vld [vmem:[%s4547_s0 + $0xe0] sm:$0xff] }
  0xda   :  { %3342 = vmatprep.subr.bf16.mxu1 %v3613_v9  ;;  %v45_v9 = vld [vmem:[%s4547_s0 + $0xf0] sm:$0xff] }
  0xdc   :  { %3321 = vmatpush3.bf16.msra.mxu0 %v3614_v10  ;;  %v78_v10 = vpack.c.bf16 %v46_v7, %v46_v7 }
  0xdd   :  { %3343 = vmatpush3.bf16.msra.mxu1 %v3615_v11  ;;  %3322 = vmatprep.subr.bf16.mxu0 %v3616_v12  ;;  %v75_v11 = vpack.c.bf16 %v43_v8, %v43_v8  ;;  %v77_v12 = vpack.c.bf16 %v45_v9, %v45_v9 }
  0xde   :  { %3344 = vmatprep.subr.bf16.mxu1 %v3617_v13 }
  0xe0   :  { %3323 = vmatpush3.bf16.msra.mxu0 %v3618_v14 }
  0xe1   :  { %3345 = vmatpush3.bf16.msra.mxu1 %v3619_v15  ;;  %3352 = vmatprep.subr.bf16.mxu0 %v3620_v24 }
  0xe2   :  { %3374 = vmatprep.subr.bf16.mxu1 %v3621_v25 }
  0xe3   :  { %2647 = vmatmul.mubr.bf16.vlgmr.msra.gmra.mrb[24].mxu0 %v71_v21 }
  0xe4   :  { %2687 = vmatmul.mubr.bf16.vlgmr.msra.gmra.mrb[24].mxu1 %v73_v23  ;;  %3353 = vmatpush3.bf16.msra.mxu0 %v3622_v26 }
  0xe5   :  { %3375 = vmatpush3.bf16.msra.mxu1 %v3623_v27  ;;  %3354 = vmatprep.subr.bf16.mxu0 %v3624_v28 }
  0xe6   :  { %3376 = vmatprep.subr.bf16.mxu1 %v3625_v29  ;;  %2726 = vmatprep.mubr.bf16.mxu0 %v76_v6 }
  0xe7   :  { %2766 = vmatprep.mubr.bf16.mxu1 %v78_v10 }
  0xe8   :  { %3355 = vmatpush3.bf16.msra.mxu0 %v3626_v30 }
  0xe9   :  { %3377 = vmatpush3.bf16.msra.mxu1 %v3627_v31  ;;  %3356 = vmatprep.subr.bf16.mxu0 %v3628_v32 }
  0xea   :  { %3378 = vmatprep.subr.bf16.mxu1 %v3629_v33 }
  0xec   :  { %3357 = vmatpush3.bf16.msra.mxu0 %v3630_v34 }
  0xed   :  { %3379 = vmatpush3.bf16.msra.mxu1 %v3631_v35  ;;  %3358 = vmatprep.subr.bf16.mxu0 %v3632_v36 }
  0xee   :  { %3380 = vmatprep.subr.bf16.mxu1 %v3633_v37 }
  0xf0   :  { %3359 = vmatpush3.bf16.msra.mxu0 %v3634_v39 }
  0xf1   :  { %3381 = vmatpush3.bf16.msra.mxu1 %v3635_v41  ;;  %3360 = vmatprep.subr.bf16.mxu0 %v3636_v43 }
  0xf2   :  { %3382 = vmatprep.subr.bf16.mxu1 %v3637_v46 }
  0xf4   :  { %3361 = vmatpush3.bf16.msra.mxu0 %v3638_v49 }
  0xf5   :  { %3383 = vmatpush3.bf16.msra.mxu1 %v3639_v51  ;;  %3362 = vmatprep.subr.bf16.mxu0 %v3640_v55 }
  0xf6   :  { %v3060_v38 = vpop.f32.mrb[0].mxu0  ;;  %3384 = vmatprep.subr.bf16.mxu1 %v3641_v57 }
  0xf7   :  { %v3082_v40 = vpop.f32.mrb[0].mxu1  ;;  %v3061_v42 = vpop.f32.mrb[1].mxu0 }
  0xf8   :  { %v3062_v44 = vadd.f32 %v3061_v42, %v3060_v38  ;;  %v3083_v45 = vpop.f32.mrb[1].mxu1  ;;  %v3063_v48 = vpop.f32.mrb[2].mxu0  ;;  %3363 = vmatpush3.bf16.msra.mxu0 %v3642_v59 }
  0xf9   :  { %v3084_v47 = vadd.f32 %v3083_v45, %v3082_v40  ;;  %v3085_v50 = vpop.f32.mrb[2].mxu1  ;;  %v3064_v53 = vpop.f32.mrb[3].mxu0  ;;  %3385 = vmatpush3.bf16.msra.mxu1 %v3643_v60  ;;  %3364 = vmatprep.subr.bf16.mxu0 %v3644_v61 }
  0xfa   :  { %v2169_v54 = vadd.f32 %v3062_v44, %v2786_v52  ;;  %v3086_v56 = vpop.f32.mrb[3].mxu1  ;;  %3386 = vmatprep.subr.bf16.mxu1 %v3645_v62 }
  0xfc   :  { %v2209_v58 = vadd.f32 %v3084_v47, %v2169_v54  ;;  %3365 = vmatpush3.bf16.msra.mxu0 %v3646_v63 }
  0xfd   :  { %3387 = vmatpush3.bf16.msra.mxu1 %v3647_v0  ;;  %3366 = vmatprep.subr.bf16.mxu0 %v3648_v1 }
  0xfe   :  { %3388 = vmatprep.subr.bf16.mxu1 %v3649_v2 }
 0x100   :  { %3367 = vmatpush3.bf16.msra.mxu0 %v3650_v3 }
 0x101   :  { %3389 = vmatpush3.bf16.msra.mxu1 %v3651_v4 }
 0x103   :  { %2727 = vmatmul.mubr.bf16.vlgmr.msra.gmra.mrb[28].mxu0 %v75_v11 }
 0x104   :  { %2767 = vmatmul.mubr.bf16.vlgmr.msra.gmra.mrb[28].mxu1 %v77_v12 }
 0x116   :  { %v3104_v13 = vpop.f32.mrb[4].mxu0 }
 0x117   :  { %v3126_v14 = vpop.f32.mrb[4].mxu1  ;;  %v3105_v15 = vpop.f32.mrb[5].mxu0 }
 0x118   :  { %v3106_v16 = vadd.f32 %v3105_v15, %v3104_v13  ;;  %v3127_v17 = vpop.f32.mrb[5].mxu1  ;;  %v3107_v18 = vpop.f32.mrb[6].mxu0 }
 0x119   :  { %v3128_v19 = vadd.f32 %v3127_v17, %v3126_v14  ;;  %v3129_v20 = vpop.f32.mrb[6].mxu1  ;;  %v3108_v21 = vpop.f32.mrb[7].mxu0 }
 0x11a   :  { %v2249_v22 = vadd.f32 %v3106_v16, %v2209_v58  ;;  %v3130_v23 = vpop.f32.mrb[7].mxu1 }
 0x11c   :  { %v2289_v24 = vadd.f32 %v3128_v19, %v2249_v22 }
 0x136   :  { %v3148_v25 = vpop.f32.mrb[8].mxu0 }
 0x137   :  { %v3170_v26 = vpop.f32.mrb[8].mxu1  ;;  %v3149_v27 = vpop.f32.mrb[9].mxu0 }
 0x138   :  { %v3150_v28 = vadd.f32 %v3149_v27, %v3148_v25  ;;  %v3171_v29 = vpop.f32.mrb[9].mxu1  ;;  %v3151_v30 = vpop.f32.mrb[10].mxu0 }
 0x139   :  { %v3172_v31 = vadd.f32 %v3171_v29, %v3170_v26  ;;  %v3173_v32 = vpop.f32.mrb[10].mxu1  ;;  %v3152_v33 = vpop.f32.mrb[11].mxu0 }
 0x13a   :  { %v2329_v34 = vadd.f32 %v3150_v28, %v2289_v24  ;;  %v3174_v35 = vpop.f32.mrb[11].mxu1 }
 0x13c   :  { %v2369_v36 = vadd.f32 %v3172_v31, %v2329_v34 }
 0x156   :  { %v3192_v37 = vpop.f32.mrb[12].mxu0 }
 0x157   :  { %v3214_v38 = vpop.f32.mrb[12].mxu1  ;;  %v3193_v39 = vpop.f32.mrb[13].mxu0 }
 0x158   :  { %v3215_v40 = vpop.f32.mrb[13].mxu1  ;;  %v3194_v41 = vadd.f32 %v3193_v39, %v3192_v37  ;;  %v3195_v43 = vpop.f32.mrb[14].mxu0 }
 0x159   :  { %v3216_v42 = vadd.f32 %v3215_v40, %v3214_v38  ;;  %v3217_v44 = vpop.f32.mrb[14].mxu1  ;;  %v3196_v45 = vpop.f32.mrb[15].mxu0 }
 0x15a   :  { %v3218_v46 = vpop.f32.mrb[15].mxu1  ;;  %v2409_v47 = vadd.f32 %v3194_v41, %v2369_v36 }
 0x15c   :  { %v2449_v48 = vadd.f32 %v3216_v42, %v2409_v47 }
 0x176   :  { %v3236_v49 = vpop.f32.mrb[16].mxu0 }
 0x177   :  { %v3258_v50 = vpop.f32.mrb[16].mxu1  ;;  %v3237_v51 = vpop.f32.mrb[17].mxu0 }
 0x178   :  { %v3238_v52 = vadd.f32 %v3237_v51, %v3236_v49  ;;  %v3259_v53 = vpop.f32.mrb[17].mxu1  ;;  %v3239_v54 = vpop.f32.mrb[18].mxu0 }
 0x179   :  { %v3260_v55 = vadd.f32 %v3259_v53, %v3258_v50  ;;  %v3261_v56 = vpop.f32.mrb[18].mxu1  ;;  %v3240_v57 = vpop.f32.mrb[19].mxu0 }
 0x17a   :  { %v2489_v58 = vadd.f32 %v3238_v52, %v2449_v48  ;;  %v3262_v59 = vpop.f32.mrb[19].mxu1 }
 0x17c   :  { %v2529_v60 = vadd.f32 %v3260_v55, %v2489_v58 }
 0x196   :  { %v3280_v61 = vpop.f32.mrb[20].mxu0 }
 0x197   :  { %v3302_v62 = vpop.f32.mrb[20].mxu1  ;;  %v3281_v63 = vpop.f32.mrb[21].mxu0 }
 0x198   :  { %v3282_v0 = vadd.f32 %v3281_v63, %v3280_v61  ;;  %v3303_v1 = vpop.f32.mrb[21].mxu1  ;;  %v3283_v2 = vpop.f32.mrb[22].mxu0 }
 0x199   :  { %v3304_v3 = vadd.f32 %v3303_v1, %v3302_v62  ;;  %v3305_v4 = vpop.f32.mrb[22].mxu1  ;;  %v3284_v5 = vpop.f32.mrb[23].mxu0 }
 0x19a   :  { %v2569_v6 = vadd.f32 %v3282_v0, %v2529_v60  ;;  %v3306_v7 = vpop.f32.mrb[23].mxu1 }
 0x19c   :  { %v2609_v8 = vadd.f32 %v3304_v3, %v2569_v6 }
 0x1b6   :  { %v3324_v9 = vpop.f32.mrb[24].mxu0 }
 0x1b7   :  { %v3346_v10 = vpop.f32.mrb[24].mxu1  ;;  %v3325_v11 = vpop.f32.mrb[25].mxu0 }
 0x1b8   :  { %v3347_v12 = vpop.f32.mrb[25].mxu1  ;;  %v3326_v13 = vadd.f32 %v3325_v11, %v3324_v9  ;;  %v3327_v15 = vpop.f32.mrb[26].mxu0 }
 0x1b9   :  { %v3348_v14 = vadd.f32 %v3347_v12, %v3346_v10  ;;  %v3349_v16 = vpop.f32.mrb[26].mxu1  ;;  %v3328_v17 = vpop.f32.mrb[27].mxu0 }
 0x1ba   :  { %v3350_v18 = vpop.f32.mrb[27].mxu1  ;;  %v2649_v19 = vadd.f32 %v3326_v13, %v2609_v8 }
 0x1bc   :  { %v2689_v20 = vadd.f32 %v3348_v14, %v2649_v19 }
 0x1d6   :  { %v3368_v21 = vpop.f32.mrb[28].mxu0 }
 0x1d7   :  { %v3390_v22 = vpop.f32.mrb[28].mxu1  ;;  %v3369_v23 = vpop.f32.mrb[29].mxu0 }
 0x1d8   :  { %v3370_v24 = vadd.f32 %v3369_v23, %v3368_v21  ;;  %v3391_v25 = vpop.f32.mrb[29].mxu1  ;;  %v3371_v26 = vpop.f32.mrb[30].mxu0 }
 0x1d9   :  { %v3392_v27 = vadd.f32 %v3391_v25, %v3390_v22  ;;  %v3393_v28 = vpop.f32.mrb[30].mxu1  ;;  %v3372_v29 = vpop.f32.mrb[31].mxu0 }
 0x1da   :  { %v2729_v30 = vadd.f32 %v3370_v24, %v2689_v20  ;;  %v3394_v31 = vpop.f32.mrb[31].mxu1 }
 0x1dc   :  { %v2769_v32 = vadd.f32 %v3392_v27, %v2729_v30 }
 0x1de   :  { %v3043_v33 = vmul.f32 -1.442695, %v2769_v32 }
 0x1e0   :  { %3652 = vpow2.f32 %v3043_v33 }
 0x1ea   :  { %v3653_v34 = vpop.eup %3652 }
 0x1eb   :  { %v2777_v35 = vadd.f32 1.0, %v3653_v34 }
 0x1ed   :  { %3654 = vrcp.f32 %v2777_v35 }
 0x1f7   :  { %v3655_v36 = vpop.eup %3654 }
 0x1f8   :  { %2781 = vst.msk [vmem:[%s4549_s3] sm:$0xff] %vm2780_vm0, %v3655_v36 }

</bundles_post_ra>
